<compile_context>
chip_gen: v7x
topology: tpu7x:2x2x1
jax: 0.10.0
libtpu: 0.0.40
codegen_flags: <defaults>
</compile_context>

<pallas_src>
import functools

import jax
import jax.numpy as jnp
from jax.experimental import pallas as pl
from jax.experimental.pallas import tpu as pltpu


def _sobel_kernel(x_ref, o_ref, *, H, W):
    """x_ref: (nb, L) f32;  o_ref: (nb, 2L) f32 (gx in [:, :L], gy in [:, L:])."""
    L = H * W
    x = x_ref[...]                                  # dense lane-major load

    def rot(v, s):
        # out[..., i] = v[..., (i - s) % L]   (jnp.roll semantics, XLU rotate)
        return pltpu.roll(v, shift=s % L, axis=1)

    # Valid 3x3 conv with edge_kx / edge_ky is a central difference:
    #   gx[p] = 0.5*(x[p+1] - x[p-1]),  gy[p] = 0.5*(x[p+W] - x[p-W]).
    # Cyclic wrap / cross-row contamination of the rotates only lands on the
    # boundary rows/columns, which the replication clamps below overwrite.
    gx = 0.5 * (rot(x, L - 1) - rot(x, 1))
    gy = 0.5 * (rot(x, L - W) - rot(x, W))

    # ReplicationPad2d(1) column clamp: col 0 <- col 1, col W-1 <- col W-2.
    lane = jax.lax.broadcasted_iota(jnp.int32, (1, L), 1)
    col = lane % W
    c_lo = col == 0
    c_hi = col == (W - 1)
    gx = jnp.where(c_lo, rot(gx, L - 1), jnp.where(c_hi, rot(gx, 1), gx))
    gy = jnp.where(c_lo, rot(gy, L - 1), jnp.where(c_hi, rot(gy, 1), gy))
    gx = gx.astype(o_ref.dtype)
    gy = gy.astype(o_ref.dtype)

    # Dense full-block stores of the column-clamped gradients.
    o_ref[:, :L] = gx
    o_ref[:, L:] = gy

    # ReplicationPad2d(1) row clamp as four W-long contiguous slice copies:
    # row 0 <- row 1 and row H-1 <- row H-2 of the *column-clamped* gradients
    # (this order makes the corners match ReplicationPad2d exactly).
    o_ref[:, 0:W] = gx[:, W:2 * W]
    o_ref[:, (H - 1) * W:L] = gx[:, (H - 2) * W:(H - 1) * W]
    o_ref[:, L:L + W] = gy[:, W:2 * W]
    o_ref[:, L + (H - 1) * W:] = gy[:, (H - 2) * W:(H - 1) * W]


def sobel(x, *, target_block_bytes=6 * 1024 * 1024):
    """x: (N, 1, H, W) float32 -> (N, 2, H, W) float32."""
    N, C, H, W = x.shape
    assert C == 1, "Sobel module expects a single input channel"
    assert H >= 3 and W >= 3, "3x3 valid conv + pad(1) requires H>=3 and W>=3"
    assert x.dtype == jnp.float32, "kernel is specialized to float32 input"
    L = H * W

    # ---- images per grid step (nb) ----------------------------------------
    # Sublane rule for the dense (nb, L)/(nb, 2L) blocks: nb % 8 == 0 or
    # nb == N.  Target ~6 MiB of logical HBM traffic per step (amortizes the
    # ~0.35 us per-step overhead on every generation), keep the double-buffered
    # in+out blocks plus roll temporaries inside a v7x-safe VMEM budget, and
    # keep >= 4 grid steps when that does not push blocks below ~2 MiB.
    per_img_bytes = 12 * L                        # 4 B read + 8 B written / px
    per_img_vmem = 2 * (4 * L + 8 * L) + 24 * L   # 2x-buffered blocks + temps
    vmem_budget = 44 * 1024 * 1024                # safe on v7x (64 MiB phys)
    target_nb = max(1, min(target_block_bytes // per_img_bytes,
                           vmem_budget // per_img_vmem))
    min_nb_2mb = max(1, (2 * 1024 * 1024) // per_img_bytes)
    if N // 4 >= min_nb_2mb:
        target_nb = min(target_nb, N // 4)        # >= 4 steps, blocks >= ~2 MiB
    if N <= 8 or target_nb >= N:
        nb = N                                    # single / full-batch blocks
    else:
        nb = max(8, (target_nb // 8) * 8)         # packed sublanes
    grid_len = (N + nb - 1) // nb                 # partial last block is OK
    # TODO(synk): for huge single images (nb == N == 1 still over the VMEM
    # budget) tile H into row blocks with a 1-row halo instead of whole-image
    # blocks.

    est_vmem = nb * per_img_vmem
    vmem_limit = int(min(max(est_vmem + (8 << 20), 32 << 20), 128 << 20))

    # Lane-dense flat layout; reshapes of contiguous arrays are free in XLA.
    x_flat = x.reshape(N, L)

    kernel = functools.partial(_sobel_kernel, H=H, W=W)
    out_flat = pl.pallas_call(
        kernel,
        out_shape=jax.ShapeDtypeStruct((N, 2 * L), jnp.float32),
        grid_spec=pltpu.PrefetchScalarGridSpec(
            num_scalar_prefetch=0,
            grid=(grid_len,),
            in_specs=[pl.BlockSpec((nb, L), lambda n: (n, 0))],
            out_specs=pl.BlockSpec((nb, 2 * L), lambda n: (n, 0)),
        ),
        compiler_params=pltpu.CompilerParams(
            dimension_semantics=("parallel",),
            vmem_limit_bytes=vmem_limit),
        cost_estimate=pl.CostEstimate(
            flops=12 * N * L, transcendentals=0, bytes_accessed=12 * N * L),
    )(x_flat)
    # Per image the first L outputs are gx and the next L are gy, so the
    # reshape back to (N, 2, H, W) is also free.
    return out_flat.reshape(N, 2, H, W)


def sobel_reference(x):
    # Pure-JAX reference: valid 3x3 central-difference conv + replication pad.
    gx = 0.5 * (x[:, 0, 1:-1, 2:] - x[:, 0, 1:-1, :-2])
    gy = 0.5 * (x[:, 0, 2:, 1:-1] - x[:, 0, :-2, 1:-1])
    core = jnp.stack([gx, gy], axis=1)                    # (N, 2, H-2, W-2)
    return jnp.pad(core, ((0, 0), (0, 0), (1, 1), (1, 1)), mode="edge")


if __name__ == "__main__":
    key = jax.random.PRNGKey(0)
    k1, k2 = jax.random.split(key)

    # Case 1: the shapes the module implies (batch=2, 1 channel, 16x16);
    # exercises the full-batch single-block path.
    x1 = jax.random.normal(k1, (2, 1, 16, 16), dtype=jnp.float32)
    out1 = jax.block_until_ready(sobel(x1))
    ref1 = sobel_reference(x1)
    assert out1.shape == (2, 2, 16, 16), out1.shape
    assert out1.dtype == jnp.float32
    assert jnp.allclose(out1, ref1, atol=1e-5, rtol=1e-5), \
        float(jnp.max(jnp.abs(out1 - ref1)))

    # Case 2: exercises the multi-step grid path (nb == 8, partial last block).
    x2 = jax.random.normal(k2, (10, 1, 8, 16), dtype=jnp.float32)
    out2 = jax.block_until_ready(sobel(x2, target_block_bytes=4096))
    ref2 = sobel_reference(x2)
    assert jnp.allclose(out2, ref2, atol=1e-5, rtol=1e-5), \
        float(jnp.max(jnp.abs(out2 - ref2)))

    print("KERNEL_OK")
</pallas_src>

<mosaic_0001>
module attributes {stable_mosaic.version = 11 : i64} {
  func.func @_sobel_kernel(%arg0: i32, %arg1: memref<2x256xf32, #tpu.memory_space<vmem>>, %arg2: memref<2x512xf32, #tpu.memory_space<vmem>>) attributes {dimension_semantics = [#tpu.dimension_semantics<parallel>], iteration_bounds = array<i64: 1>, scalar_prefetch = 0 : i64, scratch_operands = 0 : i64, tpu.core_type = #tpu.core_type<tc>, window_params = [{transform_indices = @transform_0, window_bounds = array<i64: 2, 256>}, {transform_indices = @transform_1, window_bounds = array<i64: 2, 512>}]} {
    %c0 = arith.constant 0 : index
    %c0_0 = arith.constant 0 : index
    %0 = vector.load %arg1[%c0, %c0_0] : memref<2x256xf32, #tpu.memory_space<vmem>>, vector<2x256xf32>
    %c255_i32 = arith.constant 255 : i32
    %1 = tpu.dynamic_rotate %0 by %c255_i32 dim 1 : vector<2x256xf32>, i32 -> vector<2x256xf32>
    %c1_i32 = arith.constant 1 : i32
    %2 = tpu.dynamic_rotate %0 by %c1_i32 dim 1 : vector<2x256xf32>, i32 -> vector<2x256xf32>
    %3 = arith.subf %1, %2 : vector<2x256xf32>
    %cst = arith.constant 5.000000e-01 : f32
    %4 = vector.broadcast %cst : f32 to vector<2x256xf32>
    %5 = arith.mulf %4, %3 : vector<2x256xf32>
    %c240_i32 = arith.constant 240 : i32
    %6 = tpu.dynamic_rotate %0 by %c240_i32 dim 1 : vector<2x256xf32>, i32 -> vector<2x256xf32>
    %c16_i32 = arith.constant 16 : i32
    %7 = tpu.dynamic_rotate %0 by %c16_i32 dim 1 : vector<2x256xf32>, i32 -> vector<2x256xf32>
    %8 = arith.subf %6, %7 : vector<2x256xf32>
    %cst_1 = arith.constant 5.000000e-01 : f32
    %9 = vector.broadcast %cst_1 : f32 to vector<2x256xf32>
    %10 = arith.mulf %9, %8 : vector<2x256xf32>
    %11 = tpu.iota {dimensions = array<i32: 1>} : vector<1x256xi32>
    %c16_i32_2 = arith.constant 16 : i32
    %c0_i32 = arith.constant 0 : i32
    %12 = arith.cmpi eq, %c16_i32_2, %c0_i32 : i32
    %c1_i32_3 = arith.constant 1 : i32
    %13 = arith.select %12, %c1_i32_3, %c16_i32_2 : i32
    %14 = vector.broadcast %13 : i32 to vector<1x256xi32>
    %15 = arith.remsi %11, %14 : vector<1x256xi32>
    %c0_i32_4 = arith.constant 0 : i32
    %16 = vector.broadcast %c0_i32_4 : i32 to vector<1x256xi32>
    %17 = arith.cmpi ne, %15, %16 : vector<1x256xi32>
    %c0_i32_5 = arith.constant 0 : i32
    %18 = vector.broadcast %c0_i32_5 : i32 to vector<1x256xi32>
    %19 = arith.cmpi slt, %15, %18 : vector<1x256xi32>
    %c0_i32_6 = arith.constant 0 : i32
    %20 = arith.cmpi slt, %13, %c0_i32_6 : i32
    %21 = vector.broadcast %20 : i1 to vector<1x256xi1>
    %22 = vector.broadcast %21 : vector<1x256xi1> to vector<1x256xi1>
    %23 = arith.xori %19, %22 : vector<1x256xi1>
    %24 = arith.andi %23, %17 : vector<1x256xi1>
    %25 = vector.broadcast %13 : i32 to vector<1x256xi32>
    %26 = arith.addi %15, %25 : vector<1x256xi32>
    %27 = arith.select %24, %26, %15 : vector<1x256xi1>, vector<1x256xi32>
    %c0_i32_7 = arith.constant 0 : i32
    %28 = vector.broadcast %c0_i32_7 : i32 to vector<1x256xi32>
    %29 = arith.cmpi eq, %27, %28 : vector<1x256xi32>
    %c15_i32 = arith.constant 15 : i32
    %30 = vector.broadcast %c15_i32 : i32 to vector<1x256xi32>
    %31 = arith.cmpi eq, %27, %30 : vector<1x256xi32>
    %c255_i32_8 = arith.constant 255 : i32
    %32 = tpu.dynamic_rotate %5 by %c255_i32_8 dim 1 : vector<2x256xf32>, i32 -> vector<2x256xf32>
    %c1_i32_9 = arith.constant 1 : i32
    %33 = tpu.dynamic_rotate %5 by %c1_i32_9 dim 1 : vector<2x256xf32>, i32 -> vector<2x256xf32>
    %34 = vector.shape_cast %31 : vector<1x256xi1> to vector<1x256xi1>
    %35 = vector.broadcast %34 : vector<1x256xi1> to vector<2x256xi1>
    %36 = arith.select %35, %33, %5 : vector<2x256xi1>, vector<2x256xf32>
    %37 = vector.shape_cast %29 : vector<1x256xi1> to vector<1x256xi1>
    %38 = vector.broadcast %37 : vector<1x256xi1> to vector<2x256xi1>
    %39 = arith.select %38, %32, %36 : vector<2x256xi1>, vector<2x256xf32>
    %c255_i32_10 = arith.constant 255 : i32
    %40 = tpu.dynamic_rotate %10 by %c255_i32_10 dim 1 : vector<2x256xf32>, i32 -> vector<2x256xf32>
    %c1_i32_11 = arith.constant 1 : i32
    %41 = tpu.dynamic_rotate %10 by %c1_i32_11 dim 1 : vector<2x256xf32>, i32 -> vector<2x256xf32>
    %42 = vector.shape_cast %31 : vector<1x256xi1> to vector<1x256xi1>
    %43 = vector.broadcast %42 : vector<1x256xi1> to vector<2x256xi1>
    %44 = arith.select %43, %41, %10 : vector<2x256xi1>, vector<2x256xf32>
    %45 = vector.shape_cast %29 : vector<1x256xi1> to vector<1x256xi1>
    %46 = vector.broadcast %45 : vector<1x256xi1> to vector<2x256xi1>
    %47 = arith.select %46, %40, %44 : vector<2x256xi1>, vector<2x256xf32>
    %c0_12 = arith.constant 0 : index
    %c0_13 = arith.constant 0 : index
    %48 = vector.load %arg2[%c0_12, %c0_13] : memref<2x512xf32, #tpu.memory_space<vmem>>, vector<2x256xf32>
    tpu.vector_store %arg2[%c0_12, %c0_13], %39 {strides = array<i32>} : memref<2x512xf32, #tpu.memory_space<vmem>>, vector<2x256xf32>,
    %c0_14 = arith.constant 0 : index
    %c256 = arith.constant 256 : index
    %49 = vector.load %arg2[%c0_14, %c256] : memref<2x512xf32, #tpu.memory_space<vmem>>, vector<2x256xf32>
    tpu.vector_store %arg2[%c0_14, %c256], %47 {strides = array<i32>} : memref<2x512xf32, #tpu.memory_space<vmem>>, vector<2x256xf32>,
    %50 = vector.extract_strided_slice %39 {offsets = [0, 16], sizes = [2, 16], strides = [1, 1]} : vector<2x256xf32> to vector<2x16xf32>
    %c0_15 = arith.constant 0 : index
    %c0_16 = arith.constant 0 : index
    %51 = vector.load %arg2[%c0_15, %c0_16] : memref<2x512xf32, #tpu.memory_space<vmem>>, vector<2x16xf32>
    tpu.vector_store %arg2[%c0_15, %c0_16], %50 {strides = array<i32>} : memref<2x512xf32, #tpu.memory_space<vmem>>, vector<2x16xf32>,
    %52 = vector.extract_strided_slice %39 {offsets = [0, 224], sizes = [2, 16], strides = [1, 1]} : vector<2x256xf32> to vector<2x16xf32>
    %c0_17 = arith.constant 0 : index
    %c240 = arith.constant 240 : index
    %53 = vector.load %arg2[%c0_17, %c240] : memref<2x512xf32, #tpu.memory_space<vmem>>, vector<2x16xf32>
    tpu.vector_store %arg2[%c0_17, %c240], %52 {strides = array<i32>} : memref<2x512xf32, #tpu.memory_space<vmem>>, vector<2x16xf32>,
    %54 = vector.extract_strided_slice %47 {offsets = [0, 16], sizes = [2, 16], strides = [1, 1]} : vector<2x256xf32> to vector<2x16xf32>
    %c0_18 = arith.constant 0 : index
    %c256_19 = arith.constant 256 : index
    %55 = vector.load %arg2[%c0_18, %c256_19] : memref<2x512xf32, #tpu.memory_space<vmem>>, vector<2x16xf32>
    tpu.vector_store %arg2[%c0_18, %c256_19], %54 {strides = array<i32>} : memref<2x512xf32, #tpu.memory_space<vmem>>, vector<2x16xf32>,
    %56 = vector.extract_strided_slice %47 {offsets = [0, 224], sizes = [2, 16], strides = [1, 1]} : vector<2x256xf32> to vector<2x16xf32>
    %c0_20 = arith.constant 0 : index
    %c496 = arith.constant 496 : index
    %57 = vector.load %arg2[%c0_20, %c496] : memref<2x512xf32, #tpu.memory_space<vmem>>, vector<2x16xf32>
    tpu.vector_store %arg2[%c0_20, %c496], %56 {strides = array<i32>} : memref<2x512xf32, #tpu.memory_space<vmem>>, vector<2x16xf32>,
    return
  }
  func.func @transform_0(%arg0: i32) -> (i32, i32) {
    %c0_i32 = arith.constant 0 : i32
    %c0_i32_0 = arith.constant 0 : i32
    return %arg0, %c0_i32 : i32, i32
  }
  func.func @transform_1(%arg0: i32) -> (i32, i32) {
    %c0_i32 = arith.constant 0 : i32
    %c0_i32_0 = arith.constant 0 : i32
    return %arg0, %c0_i32 : i32, i32
  }
}

</mosaic_0001>

<bundles_post_ra>
// kernel: tpu_custom_call.1
= control target key start
LH: loop header
LB: loop body
LE: loop exit
PB: predicated region body
PF: predicated region fallthrough
CT: control target
= control target key end

     0   :  { %6 = vsyncpa [#allocation3], 0  ;;  %s408_s0 = inlined_call_operand.hbm [shape: f32[2,256], index: 0, kind: input, shape index: {}]   ;;  %s409_s1 = inlined_call_operand.hbm [shape: f32[2,512], index: 1, kind: output, shape index: {}]  }
   0x1   :  { %7 = vsyncpa [#allocation4], 0  ;;  %s283_s6 = smov [#allocation2]   ;;  %s235_s10 = scalar_lea.hbm %s408_s0, 64 }
   0x2   :  { %s14_s7 = sshll.u32 %s283_s6, 4  ;;  %p236_p0 = scmp.ne.s32.totalorder %s408_s0, %s235_s10  ;;  %s15_s7 = int_to_ptr.vmem [resolvable:$true] %s14_s7 }
   0x3   :  { %p239_p1 = scmp.lt.u32.totalorder %s235_s10, %s408_s0 }
   0x5   :  { %p241_p2 = pnand %p239_p1, %p236_p0 }
   0x7   :  { %244 = shalt.err (!%p241_p2)
}
   0x8   :  { %s245_s15 = scalar_lea.vmem %s15_s7, 64  ;;  %p250_p4 = scmp.lt.s32.totalorder %s15_s7, %s15_s7 }
   0x9   :  { %p246_p3 = scmp.ne.s32.totalorder %s15_s7, %s245_s15  ;;  %p251_p5 = scmp.lt.s32.totalorder %s245_s15, %s245_s15 }
   0xb   :  { %p252_p6 = por %p251_p5, %p250_p4 }
   0xd   :  { %p253_p7 = pnand %p252_p6, %p246_p3 }
   0xf   :  { %256 = shalt.err (!%p253_p7)
}
  0x10   :  { %17 = dma.hbm_to_vmem [thread:$0]  %s408_s0, 64, %s15_s7, [#allocation3]  }
  0x11   :  { %279 = dma.done.wait [#allocation3], 64  }
  0x12   :  { %280 = vsyncadd [#allocation3], 4294967232  ;;  %v225_v0 = vld.sshfl [vmem:[#allocation2] sm:$0x33 pattern:$0x76325410]  ;;  %v37_v2 = vlaneseq }
  0x13   :  { %s284_s18 = smov 1   ;;  %s285_s19 = smov 127   ;;  %v30_v1 = vcombine.high %v225_v0, %v225_v0  ;;  %v288_v29 = vmov 1983009808   ;;  %vm186_vm8 = vcmask 1042304   ;;  %vm174_vm9 = vcmask 123904  }
  0x14   :  { %42 = vrot.lane.b32.xlu1 %v225_v0, %s284_s18  ;;  %33 = vrot.lane.b32.xlu0 %v225_v0, %s285_s19  ;;  %s286_s20 = smov 112   ;;  %s287_s0 = smov 16   ;;  %v320_v5 = vand.u32 127, %v37_v2  ;;  %v165_v30 = vunpack.c.l.s4 %v288_v29  ;;  %v168_v36 = vshrl.u32 %v37_v2, 7 }
  0x15   :  { %s289_s21 = smov [#allocation5]  }
  0x16   :  { %vm46_vm0 = vcmp.lt.s32.totalorder %v320_v5, 1  ;;  %vm39_vm1 = vcmp.lt.s32.totalorder %v320_v5, 127  ;;  %vm57_vm2 = vcmp.lt.s32.totalorder %v320_v5, 112  ;;  %vm64_vm3 = vcmp.lt.s32.totalorder %v320_v5, 16  ;;  %s216_s22 = sshll.u32 %s289_s21, 4  ;;  %s217_s22 = int_to_ptr.vmem [resolvable:$true] %s216_s22 }
  0x17   :  { %v71_v28 = vadd.s32 128, %v320_v5  ;;  %v76_v33 = vand.u32 15, %v320_v5  ;;  %v166_v35 = vunpack.c.0.s8 %v165_v30  ;;  %s257_s23 = scalar_lea.vmem %s217_s22, 128  ;;  %p262_p9 = scmp.lt.s32.totalorder %s217_s22, %s217_s22 }
  0x18   :  { %53 = vrot.lane.b32.xlu0 %v225_v0, %s286_s20  ;;  %44 = vrot.lane.b32.xlu1 %v30_v1, %s284_s18  ;;  %p258_p8 = scmp.ne.s32.totalorder %s217_s22, %s257_s23  ;;  %p263_p10 = scmp.lt.s32.totalorder %s257_s23, %s257_s23 }
  0x19   :  { %v83_v34 = vand.u32 15, %v71_v28  ;;  %vm344_vm4 = vcmp.eq.s32.totalorder %v76_v33, 15  ;;  %vm356_vm6 = vcmp.eq.s32.totalorder %v76_v33, 0  ;;  %v169_v45 = vsub.s32 %v166_v35, %v168_v36 }
  0x1a   :  { %p264_p11 = por %p263_p10, %p262_p9 }
  0x1b   :  { %vm350_vm5 = vcmp.eq.s32.totalorder %v83_v34, 15  ;;  %vm360_vm7 = vcmp.eq.s32.totalorder %v83_v34, 0 }
  0x1c   :  { %55 = vrot.lane.b32.xlu1 %v30_v1, %s286_s20  ;;  %35 = vrot.lane.b32.xlu0 %v30_v1, %s285_s19  ;;  %p265_p12 = pnand %p264_p11, %p258_p8 }
  0x20   :  { %62 = vrot.lane.b32.xlu1 %v30_v1, %s287_s0  ;;  %60 = vrot.lane.b32.xlu0 %v225_v0, %s287_s0 }
  0x86   :  { %v43_v3 = vpop.permute.xlu1 %42  ;;  %v34_v4 = vpop.permute.xlu0 %33 }
  0x8a   :  { %v54_v6 = vpop.permute.xlu0 %53  ;;  %v45_v7 = vpop.permute.xlu1 %44 }
  0x8b   :  { %v47_v10 = vsel %vm46_vm0, %v43_v3, %v45_v7  ;;  %v48_v11 = vsel %vm46_vm0, %v45_v7, %v43_v3 }
  0x8e   :  { %v56_v8 = vpop.permute.xlu1 %55  ;;  %v36_v9 = vpop.permute.xlu0 %35 }
  0x8f   :  { %v40_v12 = vsel %vm39_vm1, %v34_v4, %v36_v9  ;;  %v41_v13 = vsel %vm39_vm1, %v36_v9, %v34_v4  ;;  %v58_v20 = vsel %vm57_vm2, %v54_v6, %v56_v8  ;;  %v59_v21 = vsel %vm57_vm2, %v56_v8, %v54_v6 }
  0x90   :  { %v49_v14 = vsub.f32 %v40_v12, %v48_v11  ;;  %v50_v15 = vsub.f32 %v41_v13, %v47_v10 }
  0x92   :  { %v51_v16 = vmul.f32 0.5, %v49_v14  ;;  %v52_v17 = vmul.f32 0.5, %v50_v15  ;;  %v63_v18 = vpop.permute.xlu1 %62  ;;  %v61_v19 = vpop.permute.xlu0 %60 }
  0x93   :  { %v65_v22 = vsel %vm64_vm3, %v61_v19, %v63_v18  ;;  %v66_v23 = vsel %vm64_vm3, %v63_v18, %v61_v19 }
  0x94   :  { %v67_v24 = vsub.f32 %v58_v20, %v66_v23  ;;  %v68_v25 = vsub.f32 %v59_v21, %v65_v22  ;;  %108 = vrot.lane.b32.xlu1 %v52_v17, %s284_s18  ;;  %106 = vrot.lane.b32.xlu0 %v51_v16, %s284_s18 }
  0x96   :  { %v69_v26 = vmul.f32 0.5, %v67_v24  ;;  %v70_v27 = vmul.f32 0.5, %v68_v25 }
  0x98   :  { %130 = vrot.lane.b32.xlu0 %v69_v26, %s284_s18  ;;  %132 = vrot.lane.b32.xlu1 %v70_v27, %s284_s18 }
  0x9c   :  { %100 = vrot.lane.b32.xlu0 %v51_v16, %s285_s19  ;;  %102 = vrot.lane.b32.xlu1 %v52_v17, %s285_s19 }
  0xa0   :  { %124 = vrot.lane.b32.xlu0 %v69_v26, %s285_s19  ;;  %126 = vrot.lane.b32.xlu1 %v70_v27, %s285_s19 }
 0x106   :  { %v109_v31 = vpop.permute.xlu1 %108  ;;  %v107_v32 = vpop.permute.xlu0 %106 }
 0x107   :  { %v111_v40 = vsel %vm46_vm0, %v109_v31, %v107_v32  ;;  %v110_v42 = vsel %vm46_vm0, %v107_v32, %v109_v31 }
 0x108   :  { %v116_v46 = vsel %vm344_vm4, %v111_v40, %v51_v16  ;;  %v117_v49 = vsel %vm350_vm5, %v110_v42, %v52_v17 }
 0x10a   :  { %v133_v37 = vpop.permute.xlu1 %132  ;;  %v131_v38 = vpop.permute.xlu0 %130 }
 0x10b   :  { %v135_v50 = vsel %vm46_vm0, %v133_v37, %v131_v38  ;;  %v134_v53 = vsel %vm46_vm0, %v131_v38, %v133_v37 }
 0x10c   :  { %v136_v59 = vsel %vm344_vm4, %v135_v50, %v69_v26  ;;  %v137_v62 = vsel %vm350_vm5, %v134_v53, %v70_v27 }
 0x10e   :  { %v103_v47 = vpop.permute.xlu1 %102  ;;  %v101_v48 = vpop.permute.xlu0 %100 }
 0x10f   :  { %v104_v51 = vsel %vm39_vm1, %v101_v48, %v103_v47  ;;  %v105_v52 = vsel %vm39_vm1, %v103_v47, %v101_v48 }
 0x110   :  { %v122_v54 = vsel %vm356_vm6, %v104_v51, %v116_v46  ;;  %v123_v55 = vsel %vm360_vm7, %v105_v52, %v117_v49 }
 0x111   :  { %v142_v56 = vcombine.low %v122_v54, %v123_v55  ;;  %v182_v57 = vrot.slane %v123_v55, %v169_v45  ;;  %v170_v58 = vrot.slane %v122_v54, %v169_v45 }
 0x112   :  { %v127_v60 = vpop.permute.xlu1 %126  ;;  %v125_v61 = vpop.permute.xlu0 %124 }
 0x113   :  { %226 = vst.sshfl [vmem:[#allocation5] sm:$0x33 pattern:$0x76325410] %v142_v56  ;;  %v128_v63 = vsel %vm39_vm1, %v125_v61, %v127_v60  ;;  %v129_v0 = vsel %vm39_vm1, %v127_v60, %v125_v61  ;;  %183 = vrot.lane.b32.xlu1 %v182_v57, %s287_s0  ;;  %171 = vrot.lane.b32.xlu0 %v170_v58, %s286_s20 }
 0x114   :  { %v138_v1 = vsel %vm356_vm6, %v128_v63, %v136_v59  ;;  %v139_v2 = vsel %vm360_vm7, %v129_v0, %v137_v62 }
 0x115   :  { %v154_v3 = vcombine.low %v138_v1, %v139_v2  ;;  %v205_v4 = vrot.slane %v139_v2, %v169_v45  ;;  %v194_v6 = vrot.slane %v138_v1, %v169_v45 }
 0x117   :  { %227 = vst.sshfl [vmem:[#allocation5 + $0x4] sm:$0x33 pattern:$0x76325410] %v154_v3  ;;  %206 = vrot.lane.b32.xlu1 %v205_v4, %s287_s0  ;;  %195 = vrot.lane.b32.xlu0 %v194_v6, %s286_s20 }
 0x185   :  { %v184_v5 = vpop.permute.xlu1 %183  ;;  %v172_v7 = vpop.permute.xlu0 %171 }
 0x186   :  { %187 = vst.msk [vmem:[#allocation5 + $0x2] sm:$0x3] %vm186_vm8, %v184_v5 }
 0x187   :  { %175 = vst.msk [vmem:[#allocation5] sm:$0x3] %vm174_vm9, %v172_v7 }
 0x189   :  { %v207_v8 = vpop.permute.xlu1 %206  ;;  %v196_v9 = vpop.permute.xlu0 %195 }
 0x18a   :  { %209 = vst.msk [vmem:[#allocation5 + $0x6] sm:$0x3] %vm186_vm8, %v207_v8 }
 0x18b   :  { %198 = vst.msk [vmem:[#allocation5 + $0x4] sm:$0x3] %vm174_vm9, %v196_v9 }
 0x18c   :  { %268 = shalt.err (!%p265_p12)
}
 0x18d   :  { %s269_s26 = scalar_lea.hbm %s409_s1, 128 }
 0x18e   :  { %p270_p13 = scmp.ne.s32.totalorder %s409_s1, %s269_s26  ;;  %p273_p0 = scmp.lt.u32.totalorder %s269_s26, %s409_s1 }
 0x190   :  { %p275_p1 = pnand %p273_p0, %p270_p13 }
 0x192   :  { %278 = shalt.err (!%p275_p1)
}
 0x193   :  { %219 = dma.vmem_to_hbm [thread:$0]  %s217_s22, 128, %s409_s1, [#allocation4]  }
 0x194   :  { %281 = dma.done.wait [#allocation4], 128  }
 0x195   :  { %282 = vsyncadd [#allocation4], 4294967168 }
 0x196   :  { %223 = vsyncpa [#allocation3], 1 }
 0x197   :  { %224 = vsyncpa [#allocation4], 1 }

</bundles_post_ra>
